<compile_context>
chip_gen: v5e
topology: v5e:2x2
jax: 0.10.0
libtpu: 0.0.40
codegen_flags: <defaults>
</compile_context>

<pallas_src>
import jax
import jax.numpy as jnp
from jax import lax
from jax.experimental import pallas as pl
from jax.experimental.pallas import tpu as pltpu


def _mish_fast(x):
    # Mish(x) = x * tanh(softplus(x)).  With u = 1 + e^x:  tanh(ln u) = (u^2-1)/(u^2+1)
    #         = (e^2 + 2e) / (e^2 + 2e + 2)  -> one exp + one approx reciprocal on the EUP.
    # PyTorch's softplus threshold (x > 20 -> softplus == x, tanh == 1 in f32) is preserved.
    e = jnp.exp(jnp.minimum(x, 20.0))
    n = e * (e + 2.0)
    t = n * pl.reciprocal(n + 2.0, approx=True)
    return jnp.where(x > 20.0, x, x * t)


def conv_downsampling_kernel(patch_ref, pool_ref, w_ref, s_ref, b_ref, o_ref):
    # patch_ref: (Kp, tM)      zero-padded im2col columns for the conv branch
    # pool_ref : (9, C1, tM)   -inf-padded 3x3 taps for the maxpool branch
    # w_ref    : (C2, Kp)      conv weight, col index = (ky*3+kx)*C1 + ci
    # s_ref/b_ref: (C2, 1)     folded BatchNorm scale / bias
    # o_ref    : (C1+C2, tM)   [maxpool ; conv] rows (== NCHW channel order), lane-dense
    C1 = pool_ref.shape[1]

    # ---- maxpool branch: max over the 9 taps (unrolled elementwise max, VPU) ----
    pooled = pool_ref[0]
    for t in range(1, pool_ref.shape[0]):
        pooled = jnp.maximum(pooled, pool_ref[t])            # (C1, tM)

    # ---- conv branch: single MXU matmul, then folded BN + Mish on dense lanes ----
    y = jnp.dot(w_ref[...], patch_ref[...],
                preferred_element_type=jnp.float32)          # (C2, tM)
    y = _mish_fast(y * s_ref[...] + b_ref[...])

    # ---- concat([maxpool, conv], channel axis) -> two sub-lane-sliced, lane-dense stores ----
    o_ref[:C1, :] = pooled
    o_ref[C1:, :] = y


def _pick_tile(Mp, max_tile):
    # Mp is a multiple of 128; pick the largest 128-multiple divisor of Mp that is <= max_tile.
    q = Mp // 128
    best = 1
    for d in range(1, q + 1):
        if q % d == 0 and 128 * d <= max_tile:
            best = d
    return 128 * best


def conv_downsampling(x_nchw, w_oihw, bn, *, stride=2, max_tile=2048):
    """ConvDownSampling forward: cat([maxpool3x3/s2(x), Mish(BN(conv3x3/s2(x)))], dim=1).

    x_nchw : (N, C1, H, W) float32
    w_oihw : (C2, C1, 3, 3) float32   (PyTorch nn.Conv2d weight layout, bias=False)
    bn     : (gamma, beta, running_mean, running_var, eps)   eval-mode BatchNorm2d
    Returns (N, C1+C2, Ho, Wo) float32.
    """
    N, C1, H, W = x_nchw.shape
    C2 = w_oihw.shape[0]
    k, s, p = 3, stride, 1
    Ho = (H + 2 * p - k) // s + 1
    Wo = (W + 2 * p - k) // s + 1
    M = N * Ho * Wo

    # ---- fold BatchNorm (eval) into per-channel scale / bias ----
    gamma, beta, mean, var, eps = bn
    scale = (gamma / jnp.sqrt(var + eps)).astype(jnp.float32)
    bias = (beta - mean * scale).astype(jnp.float32)

    # ---- wrapper-side im2col: pixels (batch folded in) on the lane axis ----
    x_nhwc = jnp.transpose(x_nchw, (0, 2, 3, 1)).astype(jnp.float32)
    x_zero = jnp.pad(x_nhwc, ((0, 0), (p, p), (p, p), (0, 0)))                 # conv: 0 pad
    x_ninf = jnp.pad(x_nhwc, ((0, 0), (p, p), (p, p), (0, 0)),
                     constant_values=-jnp.inf)                                 # maxpool: -inf pad

    def taps(xp):
        t = [xp[:, ky:ky + s * Ho:s, kx:kx + s * Wo:s, :]                      # (N, Ho, Wo, C1)
             for ky in range(k) for kx in range(k)]
        t = jnp.stack(t, axis=0)                                               # (9, N, Ho, Wo, C1)
        return jnp.transpose(t, (0, 4, 1, 2, 3)).reshape(k * k, C1, M)

    conv_taps = taps(x_zero).reshape(k * k * C1, M)                            # (9*C1, M)
    pool_taps = taps(x_ninf)                                                   # (9, C1, M)

    # pad contraction dim to a sublane multiple, pixel dim to a lane multiple (128)
    K = k * k * C1
    Kp = pl.cdiv(K, 8) * 8
    Mp = pl.cdiv(M, 128) * 128
    # per-step VMEM ~ 2 * (Kp + 9*C1 + C1+C2) * tM * 4 B  -> a few hundred KiB at max_tile=2048,
    # comfortably within v7x's 64 MiB (and v5e/v6e 128 MiB) VMEM.
    tM = _pick_tile(Mp, max_tile)

    patches = jnp.pad(conv_taps, ((0, Kp - K), (0, Mp - M)))
    pool = jnp.pad(pool_taps, ((0, 0), (0, 0), (0, Mp - M)),
                   constant_values=-jnp.inf)

    # conv weight (C2, C1, 3, 3) -> (C2, 9*C1), column = (ky*3+kx)*C1 + ci, zero-pad K -> Kp
    w_mat = jnp.transpose(w_oihw.astype(jnp.float32), (0, 2, 3, 1)).reshape(C2, K)
    w_mat = jnp.pad(w_mat, ((0, 0), (0, Kp - K)))

    Ct = C1 + C2
    grid = (Mp // tM,)

    out = pl.pallas_call(
        conv_downsampling_kernel,
        out_shape=jax.ShapeDtypeStruct((Ct, Mp), jnp.float32),
        grid_spec=pltpu.PrefetchScalarGridSpec(
            num_scalar_prefetch=0,
            grid=grid,
            in_specs=[
                pl.BlockSpec((Kp, tM), lambda j: (0, j)),
                pl.BlockSpec((k * k, C1, tM), lambda j: (0, 0, j)),
                pl.BlockSpec((C2, Kp), lambda j: (0, 0)),
                pl.BlockSpec((C2, 1), lambda j: (0, 0)),
                pl.BlockSpec((C2, 1), lambda j: (0, 0)),
            ],
            out_specs=pl.BlockSpec((Ct, tM), lambda j: (0, j)),
        ),
        compiler_params=pltpu.CompilerParams(
            dimension_semantics=("parallel",)),
    )(patches, pool, w_mat, scale.reshape(C2, 1), bias.reshape(C2, 1))

    # (Ct, N*Ho*Wo) -> (N, Ct, Ho, Wo)   (already channel-major, no layout transpose of channels)
    out = out[:, :M].reshape(Ct, N, Ho, Wo)
    return jnp.transpose(out, (1, 0, 2, 3))


# ---------------- pure-JAX reference (for verification) ----------------
def _mish_ref(x):
    sp = jnp.where(x > 20.0, x, jnp.log1p(jnp.exp(jnp.minimum(x, 20.0))))
    return x * jnp.tanh(sp)


def reference(x_nchw, w_oihw, bn):
    gamma, beta, mean, var, eps = bn
    scale = gamma / jnp.sqrt(var + eps)
    bias = beta - mean * scale
    y = lax.conv_general_dilated(x_nchw, w_oihw, (2, 2), ((1, 1), (1, 1)),
                                 dimension_numbers=("NCHW", "OIHW", "NCHW"))
    y = _mish_ref(y * scale.reshape(1, -1, 1, 1) + bias.reshape(1, -1, 1, 1))
    pooled = lax.reduce_window(x_nchw, -jnp.inf, lax.max,
                               (1, 1, 3, 3), (1, 1, 2, 2),
                               ((0, 0), (0, 0), (1, 1), (1, 1)))
    return jnp.concatenate([pooled, y], axis=1)


if __name__ == "__main__":
    # ConvDownSampling(c1=4, c2=8, k=3, s=2) -> output channels = c1 + c2 = 12
    N, C1, H, W = 2, 4, 16, 16
    C2 = 8

    key = jax.random.PRNGKey(0)
    kx, kw, kg, kb, km, kv = jax.random.split(key, 6)

    x = jax.random.normal(kx, (N, C1, H, W), jnp.float32)
    w = jax.random.normal(kw, (C2, C1, 3, 3), jnp.float32) * 0.1      # PyTorch OIHW, bias=False
    bn = (1.0 + 0.1 * jax.random.normal(kg, (C2,), jnp.float32),       # gamma
          0.1 * jax.random.normal(kb, (C2,), jnp.float32),             # beta
          0.1 * jax.random.normal(km, (C2,), jnp.float32),             # running_mean
          jnp.abs(jax.random.normal(kv, (C2,), jnp.float32)) + 0.5,    # running_var
          1e-5)

    out = jax.block_until_ready(conv_downsampling(x, w, bn))
    ref = jax.block_until_ready(reference(x, w, bn))

    assert out.shape == (N, C1 + C2, H // 2, W // 2), out.shape
    assert jnp.allclose(out, ref, rtol=2e-3, atol=2e-3), \
        float(jnp.max(jnp.abs(out - ref)))
    print("KERNEL_OK")
</pallas_src>

<mosaic_0001>
module attributes {stable_mosaic.version = 11 : i64} {
  func.func @conv_downsampling_kernel(%arg0: i32, %arg1: memref<40x128xf32, #tpu.memory_space<vmem>>, %arg2: memref<9x4x128xf32, #tpu.memory_space<vmem>>, %arg3: memref<8x40xf32, #tpu.memory_space<vmem>>, %arg4: memref<8x1xf32, #tpu.memory_space<vmem>>, %arg5: memref<8x1xf32, #tpu.memory_space<vmem>>, %arg6: memref<12x128xf32, #tpu.memory_space<vmem>>) attributes {dimension_semantics = [#tpu.dimension_semantics<parallel>], iteration_bounds = array<i64: 1>, scalar_prefetch = 0 : i64, scratch_operands = 0 : i64, tpu.core_type = #tpu.core_type<tc>, window_params = [{transform_indices = @transform_0, window_bounds = array<i64: 40, 128>}, {transform_indices = @transform_1, window_bounds = array<i64: 9, 4, 128>}, {pipeline_mode = #tpu.pipeline_mode<synchronous>, transform_indices = @transform_2, window_bounds = array<i64: 8, 40>}, {pipeline_mode = #tpu.pipeline_mode<synchronous>, transform_indices = @transform_3, window_bounds = array<i64: 8, 1>}, {pipeline_mode = #tpu.pipeline_mode<synchronous>, transform_indices = @transform_4, window_bounds = array<i64: 8, 1>}, {transform_indices = @transform_5, window_bounds = array<i64: 12, 128>}]} {
    %c0 = arith.constant 0 : index
    %c0_0 = arith.constant 0 : index
    %c0_1 = arith.constant 0 : index
    %0 = vector.load %arg2[%c0, %c0_0, %c0_1] : memref<9x4x128xf32, #tpu.memory_space<vmem>>, vector<1x4x128xf32>
    %1 = vector.shape_cast %0 : vector<1x4x128xf32> to vector<4x128xf32>
    %c1 = arith.constant 1 : index
    %c0_2 = arith.constant 0 : index
    %c0_3 = arith.constant 0 : index
    %2 = vector.load %arg2[%c1, %c0_2, %c0_3] : memref<9x4x128xf32, #tpu.memory_space<vmem>>, vector<1x4x128xf32>
    %3 = vector.shape_cast %2 : vector<1x4x128xf32> to vector<4x128xf32>
    %4 = arith.maximumf %1, %3 : vector<4x128xf32>
    %c2 = arith.constant 2 : index
    %c0_4 = arith.constant 0 : index
    %c0_5 = arith.constant 0 : index
    %5 = vector.load %arg2[%c2, %c0_4, %c0_5] : memref<9x4x128xf32, #tpu.memory_space<vmem>>, vector<1x4x128xf32>
    %6 = vector.shape_cast %5 : vector<1x4x128xf32> to vector<4x128xf32>
    %7 = arith.maximumf %4, %6 : vector<4x128xf32>
    %c3 = arith.constant 3 : index
    %c0_6 = arith.constant 0 : index
    %c0_7 = arith.constant 0 : index
    %8 = vector.load %arg2[%c3, %c0_6, %c0_7] : memref<9x4x128xf32, #tpu.memory_space<vmem>>, vector<1x4x128xf32>
    %9 = vector.shape_cast %8 : vector<1x4x128xf32> to vector<4x128xf32>
    %10 = arith.maximumf %7, %9 : vector<4x128xf32>
    %c4 = arith.constant 4 : index
    %c0_8 = arith.constant 0 : index
    %c0_9 = arith.constant 0 : index
    %11 = vector.load %arg2[%c4, %c0_8, %c0_9] : memref<9x4x128xf32, #tpu.memory_space<vmem>>, vector<1x4x128xf32>
    %12 = vector.shape_cast %11 : vector<1x4x128xf32> to vector<4x128xf32>
    %13 = arith.maximumf %10, %12 : vector<4x128xf32>
    %c5 = arith.constant 5 : index
    %c0_10 = arith.constant 0 : index
    %c0_11 = arith.constant 0 : index
    %14 = vector.load %arg2[%c5, %c0_10, %c0_11] : memref<9x4x128xf32, #tpu.memory_space<vmem>>, vector<1x4x128xf32>
    %15 = vector.shape_cast %14 : vector<1x4x128xf32> to vector<4x128xf32>
    %16 = arith.maximumf %13, %15 : vector<4x128xf32>
    %c6 = arith.constant 6 : index
    %c0_12 = arith.constant 0 : index
    %c0_13 = arith.constant 0 : index
    %17 = vector.load %arg2[%c6, %c0_12, %c0_13] : memref<9x4x128xf32, #tpu.memory_space<vmem>>, vector<1x4x128xf32>
    %18 = vector.shape_cast %17 : vector<1x4x128xf32> to vector<4x128xf32>
    %19 = arith.maximumf %16, %18 : vector<4x128xf32>
    %c7 = arith.constant 7 : index
    %c0_14 = arith.constant 0 : index
    %c0_15 = arith.constant 0 : index
    %20 = vector.load %arg2[%c7, %c0_14, %c0_15] : memref<9x4x128xf32, #tpu.memory_space<vmem>>, vector<1x4x128xf32>
    %21 = vector.shape_cast %20 : vector<1x4x128xf32> to vector<4x128xf32>
    %22 = arith.maximumf %19, %21 : vector<4x128xf32>
    %c8 = arith.constant 8 : index
    %c0_16 = arith.constant 0 : index
    %c0_17 = arith.constant 0 : index
    %23 = vector.load %arg2[%c8, %c0_16, %c0_17] : memref<9x4x128xf32, #tpu.memory_space<vmem>>, vector<1x4x128xf32>
    %24 = vector.shape_cast %23 : vector<1x4x128xf32> to vector<4x128xf32>
    %25 = arith.maximumf %22, %24 : vector<4x128xf32>
    %c0_18 = arith.constant 0 : index
    %c0_19 = arith.constant 0 : index
    %26 = vector.load %arg3[%c0_18, %c0_19] : memref<8x40xf32, #tpu.memory_space<vmem>>, vector<8x40xf32>
    %c0_20 = arith.constant 0 : index
    %c0_21 = arith.constant 0 : index
    %27 = vector.load %arg1[%c0_20, %c0_21] : memref<40x128xf32, #tpu.memory_space<vmem>>, vector<40x128xf32>
    %cst = arith.constant dense<0.000000e+00> : vector<8x128xf32>
    %28 = tpu.matmul %26, %27, %cst {dimension_numbers = #tpu.dot_dimension_numbers<[1], [0], [0], [1], [0, 0, 1, 1], [], []>} : vector<8x40xf32>, vector<40x128xf32>, vector<8x128xf32> -> vector<8x128xf32>
    %c0_22 = arith.constant 0 : index
    %c0_23 = arith.constant 0 : index
    %29 = vector.load %arg4[%c0_22, %c0_23] : memref<8x1xf32, #tpu.memory_space<vmem>>, vector<8x1xf32>
    %30 = vector.broadcast %29 : vector<8x1xf32> to vector<8x128xf32>
    %31 = arith.mulf %28, %30 : vector<8x128xf32>
    %c0_24 = arith.constant 0 : index
    %c0_25 = arith.constant 0 : index
    %32 = vector.load %arg5[%c0_24, %c0_25] : memref<8x1xf32, #tpu.memory_space<vmem>>, vector<8x1xf32>
    %33 = vector.broadcast %32 : vector<8x1xf32> to vector<8x128xf32>
    %34 = arith.addf %31, %33 : vector<8x128xf32>
    %cst_26 = arith.constant 2.000000e+01 : f32
    %35 = vector.broadcast %cst_26 : f32 to vector<8x128xf32>
    %36 = arith.minimumf %34, %35 : vector<8x128xf32>
    %37 = math.exp %36 : vector<8x128xf32>
    %cst_27 = arith.constant 2.000000e+00 : f32
    %38 = vector.broadcast %cst_27 : f32 to vector<8x128xf32>
    %39 = arith.addf %37, %38 : vector<8x128xf32>
    %40 = arith.mulf %37, %39 : vector<8x128xf32>
    %cst_28 = arith.constant 2.000000e+00 : f32
    %41 = vector.broadcast %cst_28 : f32 to vector<8x128xf32>
    %42 = arith.addf %40, %41 : vector<8x128xf32>
    %43 = tpu.reciprocal %42 {approx = true} : vector<8x128xf32> -> vector<8x128xf32>
    %44 = arith.mulf %40, %43 : vector<8x128xf32>
    %cst_29 = arith.constant 2.000000e+01 : f32
    %45 = vector.broadcast %cst_29 : f32 to vector<8x128xf32>
    %46 = arith.cmpf ogt, %34, %45 : vector<8x128xf32>
    %47 = arith.mulf %34, %44 : vector<8x128xf32>
    %48 = arith.select %46, %34, %47 : vector<8x128xi1>, vector<8x128xf32>
    %c0_30 = arith.constant 0 : index
    %c0_31 = arith.constant 0 : index
    %49 = vector.load %arg6[%c0_30, %c0_31] : memref<12x128xf32, #tpu.memory_space<vmem>>, vector<4x128xf32>
    tpu.vector_store %arg6[%c0_30, %c0_31], %25 {strides = array<i32>} : memref<12x128xf32, #tpu.memory_space<vmem>>, vector<4x128xf32>,
    %c4_32 = arith.constant 4 : index
    %c0_33 = arith.constant 0 : index
    %50 = vector.load %arg6[%c4_32, %c0_33] : memref<12x128xf32, #tpu.memory_space<vmem>>, vector<8x128xf32>
    tpu.vector_store %arg6[%c4_32, %c0_33], %48 {strides = array<i32>} : memref<12x128xf32, #tpu.memory_space<vmem>>, vector<8x128xf32>,
    return
  }
  func.func @transform_0(%arg0: i32) -> (i32, i32) {
    %c0_i32 = arith.constant 0 : i32
    %c0_i32_0 = arith.constant 0 : i32
    return %c0_i32, %arg0 : i32, i32
  }
  func.func @transform_1(%arg0: i32) -> (i32, i32, i32) {
    %c0_i32 = arith.constant 0 : i32
    %c0_i32_0 = arith.constant 0 : i32
    %c0_i32_1 = arith.constant 0 : i32
    return %c0_i32, %c0_i32_0, %arg0 : i32, i32, i32
  }
  func.func @transform_2(%arg0: i32) -> (i32, i32) {
    %c0_i32 = arith.constant 0 : i32
    %c0_i32_0 = arith.constant 0 : i32
    %c0_i32_1 = arith.constant 0 : i32
    return %c0_i32, %c0_i32_0 : i32, i32
  }
  func.func @transform_3(%arg0: i32) -> (i32, i32) {
    %c0_i32 = arith.constant 0 : i32
    %c0_i32_0 = arith.constant 0 : i32
    %c0_i32_1 = arith.constant 0 : i32
    return %c0_i32, %c0_i32_0 : i32, i32
  }
  func.func @transform_4(%arg0: i32) -> (i32, i32) {
    %c0_i32 = arith.constant 0 : i32
    %c0_i32_0 = arith.constant 0 : i32
    %c0_i32_1 = arith.constant 0 : i32
    return %c0_i32, %c0_i32_0 : i32, i32
  }
  func.func @transform_5(%arg0: i32) -> (i32, i32) {
    %c0_i32 = arith.constant 0 : i32
    %c0_i32_0 = arith.constant 0 : i32
    return %c0_i32, %arg0 : i32, i32
  }
}

</mosaic_0001>

<bundles_post_ra>
// kernel: tpu_custom_call.1
= control target key start
LH: loop header
LB: loop body
LE: loop exit
PB: predicated region body
PF: predicated region fallthrough
CT: control target
= control target key end

     0   :  { %10 = vsyncpa [#allocation3], 0  ;;  %s309_s0 = inlined_call_operand.hbm [shape: f32[40,128], index: 0, kind: input, shape index: {}]   ;;  %s310_s1 = inlined_call_operand.hbm [shape: f32[9,4,128], index: 1, kind: input, shape index: {}]   ;;  %s311_s2 = inlined_call_operand.vmem [shape: f32[8,40], index: 2, kind: input, shape index: {}]   ;;  %s312_s3 = inlined_call_operand.vmem [shape: f32[8,1], index: 3, kind: input, shape index: {}]   ;;  %s313_s4 = inlined_call_operand.vmem [shape: f32[8,1], index: 4, kind: input, shape index: {}]   ;;  %s314_s5 = inlined_call_operand.hbm [shape: f32[12,128], index: 5, kind: output, shape index: {}]  }
   0x1   :  { %11 = vsyncpa [#allocation6], 0 }
   0x2   :  { %12 = vsyncpa [#allocation4], 0  ;;  %s17_s20 = sshll.u32 %s309_s0, 4  ;;  %s247_s21 = smov [#allocation2]   ;;  %s18_s20 = int_to_ptr.hbm [resolvable:$true] %s17_s20 }
   0x3   :  { %s19_s22 = sshll.u32 %s247_s21, 4  ;;  %s30_s25 = sshll.u32 %s310_s1, 4  ;;  %s20_s22 = int_to_ptr.vmem [resolvable:$true] %s19_s22  ;;  %s31_s25 = int_to_ptr.hbm [resolvable:$true] %s30_s25 }
   0x4   :  { %s248_s26 = smov 128   ;;  %s249_s27 = smov 8  }
   0x5   :  { %25 = dma.hbm_to_vmem [thread:$0]  %s18_s20, 640, %s20_s22, [#allocation3], %s248_s26, %s248_s26, %s249_s27  }
   0x6   :  { %s250_s28 = smov [#allocation5]   ;;  %s251_s30 = smov 64  }
   0x7   :  { %s32_s29 = sshll.u32 %s250_s28, 4  ;;  %s252_s0 = smov 4   ;;  %s33_s29 = int_to_ptr.vmem [resolvable:$true] %s32_s29 }
   0x8   :  { %38 = dma.hbm_to_vmem [thread:$0]  %s31_s25, 576, %s33_s29, [#allocation6], %s251_s30, %s251_s30, %s252_s0  }
   0x9   :  { %241 = dma.done.wait [#allocation3], 640  }
   0xa   :  { %242 = vsyncadd [#allocation3], 4294966656 }
   0xb   :  { %243 = dma.done.wait [#allocation6], 576  }
   0xc   :  { %244 = vsyncadd [#allocation6], 4294966720  ;;  %v253_v0 = vmov 0   ;;  %v83_v1 = vld [vmem:[#allocation2 + $0x20] sm:$0xff]  ;;  %v82_v2 = vld [vmem:[#allocation2 + $0x18] sm:$0xff]  ;;  %vm84_vm0 = vcmask 326656  }
   0xd   :  { %164 = vset.pattern.permute.xlu0 %v253_v0  ;;  %99 = vmatpush.msra.mxu0 %v83_v1  ;;  %v108_v3 = vld [vmem:[%s312_s3] sm:$0xff]  ;;  %v81_v4 = vld [vmem:[#allocation2 + $0x10] sm:$0xff]  ;;  %v80_v5 = vld [vmem:[#allocation2 + $0x8] sm:$0xff]  ;;  %s141_s12 = sshll.u32 %s314_s5, 4  ;;  %s142_s12 = int_to_ptr.hbm [resolvable:$true] %s141_s12 }
   0xe   :  { %111 = vperm.xlu0 %164, %v108_v3   ;;  %v79_v6 = vld [vmem:[#allocation2] sm:$0xff]  ;;  %v53_v9 = vld [vmem:[#allocation5] sm:$0xf]  ;;  %v55_v10 = vld [vmem:[#allocation5 + $0x4] sm:$0xf] }
   0xf   :  { %100 = vmatpush.msra.mxu0 %v82_v2  ;;  %v78_v7 = vld [vmem:[%s311_s2] sm:$0xff]  ;;  %v56_v11 = vmax.f32 %v53_v9, %v55_v10  ;;  %v58_v12 = vld [vmem:[#allocation5 + $0x8] sm:$0xf]  ;;  %v61_v14 = vld [vmem:[#allocation5 + $0xc] sm:$0xf]  ;;  %s254_s2 = smov [#allocation7]  }
  0x10   :  { %v115_v8 = vld [vmem:[%s313_s4] sm:$0xff]  ;;  %v64_v16 = vld [vmem:[#allocation5 + $0x10] sm:$0xf]  ;;  %v67_v19 = vld [vmem:[#allocation5 + $0x14] sm:$0xf]  ;;  %s139_s3 = sshll.u32 %s254_s2, 4  ;;  %s140_s3 = int_to_ptr.vmem [resolvable:$true] %s139_s3 }
  0x11   :  { %101 = vmatpush.msra.mxu0 %v81_v4  ;;  %v59_v13 = vmax.f32 %v56_v11, %v58_v12  ;;  %v70_v21 = vld [vmem:[#allocation5 + $0x18] sm:$0xf]  ;;  %v73_v23 = vld [vmem:[#allocation5 + $0x1c] sm:$0xf]  ;;  %v76_v25 = vld [vmem:[#allocation5 + $0x20] sm:$0xf] }
  0x13   :  { %102 = vmatpush.msra.mxu0 %v80_v5  ;;  %v62_v15 = vmax.f32 %v59_v13, %v61_v14 }
  0x15   :  { %103 = vmatpush.msra.mxu0 %v79_v6  ;;  %v65_v18 = vmax.f32 %v62_v15, %v64_v16 }
  0x16   :  { %155 = vmatmul.msk.f32.vlgmr.msra.gmra.mxu0 %vm84_vm0, %v78_v7  ;;  %118 = vperm.xlu0 %164, %v115_v8  }
  0x17   :  { %v68_v20 = vmax.f32 %v65_v18, %v67_v19 }
  0x19   :  { %v71_v22 = vmax.f32 %v68_v20, %v70_v21 }
  0x1b   :  { %v74_v24 = vmax.f32 %v71_v22, %v73_v23 }
  0x1d   :  { %v77_v27 = vmax.f32 %v74_v24, %v76_v25 }
  0x1f   :  { %133 = vst [vmem:[#allocation7] sm:$0xf] %v77_v27 }
  0x80   :  { %v112_v17 = vpop.permute.xlu0 %111 }
  0x88   :  { %v119_v29 = vpop.permute.xlu0 %118 }
  0x93   :  { %v105_v26 = vpop.f32.mrf.mxu0 }
  0x94   :  { %v114_v28 = vmul.f32 %v112_v17, %v105_v26 }
  0x96   :  { %v121_v30 = vadd.f32 %v119_v29, %v114_v28 }
  0x98   :  { %v122_v31 = vmin.f32 %v121_v30, 20.0  ;;  %vm130_vm1 = vcmp.gt.f32.partialorder %v121_v30, 20.0 }
  0x9a   :  { %v123_v32 = vmul.f32 1.442695, %v122_v31 }
  0x9c   :  { %165 = vpow2.f32 %v123_v32 }
  0xa2   :  { %v166_v33 = vpop.eup %165 }
  0xa3   :  { %v125_v34 = vadd.f32 2.0, %v166_v33 }
  0xa5   :  { %v126_v35 = vmul.f32 %v166_v33, %v125_v34 }
  0xa7   :  { %v127_v36 = vadd.f32 2.0, %v126_v35 }
  0xa9   :  { %167 = vrcp.f32 %v127_v36 }
  0xaf   :  { %v168_v37 = vpop.eup %167 }
  0xb0   :  { %v129_v38 = vmul.f32 %v168_v37, %v126_v35 }
  0xb2   :  { %v131_v39 = vmul.f32 %v129_v38, %v121_v30 }
  0xb4   :  { %v132_v40 = vsel %vm130_vm1, %v121_v30, %v131_v39 }
  0xb5   :  { %134 = vst [vmem:[#allocation7 + $0x4] sm:$0xff] %v132_v40 }
  0xb6   :  { %147 = dma.vmem_to_hbm [thread:$0]  %s140_s3, 256, %s142_s12, [#allocation4], %s248_s26, %s248_s26, %s249_s27  }
  0xb7   :  { %245 = dma.done.wait [#allocation4], 256  }
  0xb8   :  { %246 = vsyncadd [#allocation4], 4294967040 }
  0xb9   :  { %152 = vsyncpa [#allocation3], 1 }
  0xba   :  { %153 = vsyncpa [#allocation6], 1 }
  0xbb   :  { %154 = vsyncpa [#allocation4], 1 }

</bundles_post_ra>
